<compile_context>
chip_gen: v6e
topology: v6e:2x2x1
jax: 0.10.0
libtpu: 0.0.40
codegen_flags: <defaults>
</compile_context>

<pallas_src>
import functools

import jax
import jax.numpy as jnp
from jax import lax
from jax.experimental import pallas as pl
from jax.experimental.pallas import tpu as pltpu

_LANE = 128
_SQRT_HALF = 0.7071067811865476


def _round_up(x: int, m: int) -> int:
    return (x + m - 1) // m * m


def _detect_buffered1() -> bool:
    """True if BlockSpec(pipeline_mode=pl.Buffered(1)) is constructible on this JAX."""
    try:
        pl.BlockSpec((8, 128), lambda i: (0, 0), pipeline_mode=pl.Buffered(1))
        return True
    except Exception:
        return False


_HAS_BUFFERED1 = _detect_buffered1()


def _resident_spec(block_shape, index_map):
    """Single-buffered BlockSpec for operands whose block index never changes."""
    if _HAS_BUFFERED1:
        return pl.BlockSpec(block_shape, index_map, pipeline_mode=pl.Buffered(1))
    return pl.BlockSpec(block_shape, index_map)


def _vmem_budget_bytes() -> int:
    """~75% of physical VMEM; conservative 64 MiB assumption if query fails."""
    cap = 64 * 2**20
    try:
        info = pltpu.get_tpu_info()
        c = int(info.vmem_capacity_bytes)
        if c > 0:
            cap = c
    except Exception:
        pass
    return int(cap * 3 // 4)


def _epilogue(y, bias, gamma, beta, *, d_real, d_pad, activation):
    """bias add (+ optional LayerNorm + exact-erf GELU) on an f32 [tm, d_pad] tile.

    Padded feature columns of `y` are exactly 0 (weight cols / bias padded with 0),
    so the mean needs no mask and the variance only needs a scalar correction:
    the (d_pad - d_real) padded columns each contribute mean^2 to sum((y-mean)^2).
    gamma/beta are zero-padded, so padded output columns end up exactly 0.
    """
    y = y + bias
    if not activation:
        return y

    inv_d = jnp.float32(1.0 / d_real)
    mean = jnp.sum(y, axis=-1, keepdims=True) * inv_d
    centered = y - mean
    ssq = jnp.sum(centered * centered, axis=-1, keepdims=True)
    if d_pad != d_real:
        ssq = ssq - jnp.float32(d_pad - d_real) * (mean * mean)
    var = ssq * inv_d
    y_norm = centered * lax.rsqrt(var + jnp.float32(1e-5))   # eps matches torch LN
    y_norm = y_norm * gamma + beta
    # Exact erf GELU (torch.nn.GELU default).
    return 0.5 * y_norm * (1.0 + lax.erf(y_norm * jnp.float32(_SQRT_HALF)))


def _linear_block_kernel(x_ref, w_ref, b_ref, g_ref, bt_ref, o_ref, *,
                         d_real, d_pad, activation):
    # MXU: bf16 operands (x cast in-kernel, hidden under the matmul), f32 accumulate.
    y = jnp.dot(x_ref[...].astype(jnp.bfloat16), w_ref[...],
                preferred_element_type=jnp.float32)
    out = _epilogue(y, b_ref[...], g_ref[...], bt_ref[...],
                    d_real=d_real, d_pad=d_pad, activation=activation)
    o_ref[...] = out.astype(o_ref.dtype)


def _linear_block_kernel_ktiled(x_ref, w_ref, b_ref, g_ref, bt_ref, o_ref, acc_ref, *,
                                d_real, d_pad, activation):
    k = pl.program_id(1)

    @pl.when(k == 0)
    def _():
        acc_ref[...] = jnp.zeros_like(acc_ref)

    acc_ref[...] += jnp.dot(x_ref[...].astype(jnp.bfloat16), w_ref[...],
                            preferred_element_type=jnp.float32)

    @pl.when(k == pl.num_programs(1) - 1)
    def _():
        out = _epilogue(acc_ref[...], b_ref[...], g_ref[...], bt_ref[...],
                        d_real=d_real, d_pad=d_pad, activation=activation)
        o_ref[...] = out.astype(o_ref.dtype)


def linear_block(x, w_t, b, gamma, beta, *, activation=True,
                 out_dtype=jnp.bfloat16, tm_max=512, k_tile=512,
                 force_k_tiling=False):
    """Fused Dropout(identity) + Linear + (LayerNorm + GELU) forward pass.

    x:     [B, Din]      float
    w_t:   [Din, Dout]   float   (transpose of the torch Linear weight)
    b:     [Dout] or [1, Dout]
    gamma: [Dout] or [1, Dout]   (LayerNorm weight)
    beta:  [Dout] or [1, Dout]   (LayerNorm bias)
    """
    B, Din = x.shape
    Din_w, Dout = w_t.shape
    assert Din_w == Din, (Din_w, Din)

    din_p = _round_up(Din, _LANE)
    dout_p = _round_up(Dout, _LANE)
    out_bytes = jnp.dtype(out_dtype).itemsize
    budget = _vmem_budget_bytes()
    w_buf = 1 if _HAS_BUFFERED1 else 2

    # ---- K-tiling decision (stream K when the resident bf16 weight is too big) ----
    w_resident_bytes = w_buf * din_p * dout_p * 2
    use_k = bool(force_k_tiling) or (w_resident_bytes > int(0.4 * budget))
    if use_k:
        m = din_p // _LANE
        t_cap = max(1, min(m, _round_up(max(k_tile, _LANE), _LANE) // _LANE))
        best = 1
        for d in range(1, t_cap + 1):        # largest divisor of m with tk <= k_tile
            if m % d == 0:
                best = d
        tk = best * _LANE
    else:
        tk = din_p
    nk = din_p // tk
    if nk == 1:
        use_k = False
        tk = din_p

    # ---- batch tile selection ----
    def _est(tm):
        xb = 2 * tm * tk * 4                                  # x tiles (orig dtype<=f32), 2-buffered
        if use_k:
            wb = 2 * tk * dout_p * 2                          # streamed bf16 W tiles
            accb = tm * dout_p * 4                            # f32 accumulator scratch
        else:
            wb = w_buf * din_p * dout_p * 2                   # resident bf16 weight
            accb = 0
        ob = 2 * tm * dout_p * out_bytes                      # output tiles
        params = 3 * 8 * dout_p * 4                           # bias/gamma/beta (sublane-padded)
        epi = 4 * tm * dout_p * 4                             # f32 epilogue temporaries
        return xb + wb + accb + ob + params + epi

    b8 = _round_up(B, 8)
    tm = min(_round_up(tm_max, 8), b8)
    # Bound batch-padding waste to ~12.5%.
    while tm > 64 and (_round_up(b8, tm) - b8) * 8 > b8:
        tm = max(8, _round_up(tm // 2, 8))
    # Fit the VMEM budget (leave ~10% slack for compiler scratch).
    while tm > 8 and _est(tm) > int(0.9 * budget):
        tm = max(8, _round_up(tm // 2, 8))
    # >= 2 grid steps on the parallel batch axis (2-TC sharding on v7x).
    if _round_up(B, tm) // tm == 1 and B >= 16:
        tm = _round_up((B + 1) // 2, 8)
    b_p = _round_up(B, tm)

    # ---- operand prep (pad only when shapes require it; x keeps its dtype) ----
    x_in = x
    if (b_p != B) or (din_p != Din):
        x_in = jnp.pad(x, ((0, b_p - B), (0, din_p - Din)))

    w_in = w_t.astype(jnp.bfloat16)
    if (din_p != Din) or (dout_p != Dout):
        w_in = jnp.pad(w_in, ((0, din_p - Din), (0, dout_p - Dout)))

    def _prep_param(p):
        p = jnp.reshape(p, (1, -1)).astype(jnp.float32)
        if dout_p != Dout:
            p = jnp.pad(p, ((0, 0), (0, dout_p - Dout)))
        return p

    bias_p = _prep_param(b)
    gamma_p = _prep_param(gamma)
    beta_p = _prep_param(beta)

    kern_kwargs = dict(d_real=Dout, d_pad=dout_p, activation=bool(activation))

    if not use_k:
        grid = (b_p // tm,)
        kern = functools.partial(_linear_block_kernel, **kern_kwargs)
        in_specs = [
            pl.BlockSpec((tm, din_p), lambda i: (i, 0)),            # x: streamed per tile
            _resident_spec((din_p, dout_p), lambda i: (0, 0)),      # W: VMEM-resident
            _resident_spec((1, dout_p), lambda i: (0, 0)),          # bias
            _resident_spec((1, dout_p), lambda i: (0, 0)),          # gamma
            _resident_spec((1, dout_p), lambda i: (0, 0)),          # beta
        ]
        out_specs = pl.BlockSpec((tm, dout_p), lambda i: (i, 0))
        scratch_shapes = []
        dims = ("parallel",)
    else:
        grid = (b_p // tm, nk)
        kern = functools.partial(_linear_block_kernel_ktiled, **kern_kwargs)
        in_specs = [
            pl.BlockSpec((tm, tk), lambda i, k: (i, k)),            # x K-tiles
            pl.BlockSpec((tk, dout_p), lambda i, k: (k, 0)),        # W K-tiles (streamed)
            _resident_spec((1, dout_p), lambda i, k: (0, 0)),       # bias
            _resident_spec((1, dout_p), lambda i, k: (0, 0)),       # gamma
            _resident_spec((1, dout_p), lambda i, k: (0, 0)),       # beta
        ]
        out_specs = pl.BlockSpec((tm, dout_p), lambda i, k: (i, 0))
        scratch_shapes = [pltpu.VMEM((tm, dout_p), jnp.float32)]
        dims = ("parallel", "arbitrary")

    out_p = pl.pallas_call(
        kern,
        out_shape=jax.ShapeDtypeStruct((b_p, dout_p), out_dtype),
        grid=grid,
        in_specs=in_specs,
        out_specs=out_specs,
        scratch_shapes=scratch_shapes,
        compiler_params=pltpu.CompilerParams(
            dimension_semantics=dims,
            vmem_limit_bytes=int(budget),
        ),
    )(x_in, w_in, bias_p, gamma_p, beta_p)

    return out_p[:B, :Dout]


if __name__ == "__main__":
    key = jax.random.PRNGKey(0)

    def make_inputs(k, batch, din, dout):
        kx, kw, kb = jax.random.split(k, 3)
        x = jax.random.normal(kx, (batch, din), dtype=jnp.float32)
        bound = 1.0 / (din ** 0.5)
        w = jax.random.uniform(kw, (dout, din), jnp.float32, -bound, bound)  # torch layout
        w_t = jnp.transpose(w)                                               # [Din, Dout]
        b = jax.random.uniform(kb, (1, dout), jnp.float32, -bound, bound)
        gamma = jnp.ones((1, dout), jnp.float32)   # LayerNorm weight init = 1
        beta = jnp.zeros((1, dout), jnp.float32)   # LayerNorm bias init = 0
        return x, w_t, b, gamma, beta

    def reference(x, w_t, b, gamma, beta):
        # Mirror the kernel numerics: bf16 matmul operands, f32 accumulation,
        # f32 LayerNorm + exact-erf GELU.
        xb = x.astype(jnp.bfloat16).astype(jnp.float32)
        wb = w_t.astype(jnp.bfloat16).astype(jnp.float32)
        y = xb @ wb + b
        mu = jnp.mean(y, axis=-1, keepdims=True)
        var = jnp.mean((y - mu) ** 2, axis=-1, keepdims=True)
        yn = (y - mu) / jnp.sqrt(var + 1e-5) * gamma + beta
        return 0.5 * yn * (1.0 + lax.erf(yn / jnp.sqrt(2.0)))

    k1, k2 = jax.random.split(key)

    # Case 1: small shapes consistent with the module (batch=8, input_dim=32, output_dim=32).
    args1 = make_inputs(k1, 8, 32, 32)
    ref1 = reference(*args1)

    out1_bf16 = jax.block_until_ready(linear_block(*args1))                       # default bf16 out
    out1_f32 = jax.block_until_ready(linear_block(*args1, out_dtype=jnp.float32))

    assert out1_bf16.shape == (8, 32) and out1_bf16.dtype == jnp.bfloat16
    assert out1_f32.shape == (8, 32) and out1_f32.dtype == jnp.float32
    assert jnp.allclose(out1_bf16.astype(jnp.float32), ref1, atol=3e-2, rtol=3e-2), \
        "bf16-output mismatch vs reference"
    assert jnp.allclose(out1_f32, ref1, atol=2e-3, rtol=2e-3), \
        "f32-output mismatch vs reference"

    # Case 2: exercise the K-tiled accumulator path and the multi-step batch grid.
    args2 = make_inputs(k2, 64, 256, 256)
    ref2 = reference(*args2)
    out2 = jax.block_until_ready(
        linear_block(*args2, out_dtype=jnp.float32, force_k_tiling=True, k_tile=128))
    assert out2.shape == (64, 256) and out2.dtype == jnp.float32
    assert jnp.allclose(out2, ref2, atol=2e-3, rtol=2e-3), \
        "K-tiled path mismatch vs reference"

    print("KERNEL_OK")
</pallas_src>

<mosaic_0001>
module attributes {stable_mosaic.version = 11 : i64} {
  func.func @_linear_block_kernel(%arg0: i32, %arg1: memref<8x128xf32, #tpu.memory_space<vmem>>, %arg2: memref<128x128xbf16, #tpu.memory_space<vmem>>, %arg3: memref<1x128xf32, #tpu.memory_space<vmem>>, %arg4: memref<1x128xf32, #tpu.memory_space<vmem>>, %arg5: memref<1x128xf32, #tpu.memory_space<vmem>>, %arg6: memref<8x128xbf16, #tpu.memory_space<vmem>>) attributes {dimension_semantics = [#tpu.dimension_semantics<parallel>], iteration_bounds = array<i64: 1>, scalar_prefetch = 0 : i64, scratch_operands = 0 : i64, tpu.core_type = #tpu.core_type<tc>, window_params = [{transform_indices = @transform_0, window_bounds = array<i64: 8, 128>}, {pipeline_mode = #tpu.pipeline_mode<synchronous>, transform_indices = @transform_1, window_bounds = array<i64: 128, 128>}, {pipeline_mode = #tpu.pipeline_mode<synchronous>, transform_indices = @transform_2, window_bounds = array<i64: 1, 128>}, {pipeline_mode = #tpu.pipeline_mode<synchronous>, transform_indices = @transform_3, window_bounds = array<i64: 1, 128>}, {pipeline_mode = #tpu.pipeline_mode<synchronous>, transform_indices = @transform_4, window_bounds = array<i64: 1, 128>}, {transform_indices = @transform_5, window_bounds = array<i64: 8, 128>}]} {
    %c0 = arith.constant 0 : index
    %c0_0 = arith.constant 0 : index
    %0 = vector.load %arg1[%c0, %c0_0] : memref<8x128xf32, #tpu.memory_space<vmem>>, vector<8x128xf32>
    %1 = arith.truncf %0 : vector<8x128xf32> to vector<8x128xbf16>
    %c0_1 = arith.constant 0 : index
    %c0_2 = arith.constant 0 : index
    %2 = vector.load %arg2[%c0_1, %c0_2] : memref<128x128xbf16, #tpu.memory_space<vmem>>, vector<128x128xbf16>
    %cst = arith.constant dense<0.000000e+00> : vector<8x128xf32>
    %3 = tpu.matmul %1, %2, %cst {dimension_numbers = #tpu.dot_dimension_numbers<[1], [0], [0], [1], [0, 0, 1, 1], [], []>} : vector<8x128xbf16>, vector<128x128xbf16>, vector<8x128xf32> -> vector<8x128xf32>
    %c0_3 = arith.constant 0 : index
    %c0_4 = arith.constant 0 : index
    %4 = vector.load %arg3[%c0_3, %c0_4] : memref<1x128xf32, #tpu.memory_space<vmem>>, vector<1x128xf32>
    %c0_5 = arith.constant 0 : index
    %c0_6 = arith.constant 0 : index
    %5 = vector.load %arg4[%c0_5, %c0_6] : memref<1x128xf32, #tpu.memory_space<vmem>>, vector<1x128xf32>
    %c0_7 = arith.constant 0 : index
    %c0_8 = arith.constant 0 : index
    %6 = vector.load %arg5[%c0_7, %c0_8] : memref<1x128xf32, #tpu.memory_space<vmem>>, vector<1x128xf32>
    %7 = vector.broadcast %4 : vector<1x128xf32> to vector<8x128xf32>
    %8 = arith.addf %3, %7 : vector<8x128xf32>
    %cst_9 = arith.constant dense<0.000000e+00> : vector<8xf32>
    %9 = vector.multi_reduction <add>, %8, %cst_9 [1] : vector<8x128xf32> to vector<8xf32>
    %10 = vector.shape_cast %9 : vector<8xf32> to vector<8x1xf32>
    %cst_10 = arith.constant 3.125000e-02 : f32
    %11 = vector.broadcast %cst_10 : f32 to vector<8x1xf32>
    %12 = arith.mulf %10, %11 : vector<8x1xf32>
    %13 = vector.broadcast %12 : vector<8x1xf32> to vector<8x128xf32>
    %14 = arith.subf %8, %13 : vector<8x128xf32>
    %15 = arith.mulf %14, %14 : vector<8x128xf32>
    %cst_11 = arith.constant dense<0.000000e+00> : vector<8xf32>
    %16 = vector.multi_reduction <add>, %15, %cst_11 [1] : vector<8x128xf32> to vector<8xf32>
    %17 = vector.shape_cast %16 : vector<8xf32> to vector<8x1xf32>
    %18 = arith.mulf %12, %12 : vector<8x1xf32>
    %cst_12 = arith.constant 9.600000e+01 : f32
    %19 = vector.broadcast %cst_12 : f32 to vector<8x1xf32>
    %20 = arith.mulf %19, %18 : vector<8x1xf32>
    %21 = arith.subf %17, %20 : vector<8x1xf32>
    %cst_13 = arith.constant 3.125000e-02 : f32
    %22 = vector.broadcast %cst_13 : f32 to vector<8x1xf32>
    %23 = arith.mulf %21, %22 : vector<8x1xf32>
    %cst_14 = arith.constant 9.99999974E-6 : f32
    %24 = vector.broadcast %cst_14 : f32 to vector<8x1xf32>
    %25 = arith.addf %23, %24 : vector<8x1xf32>
    %26 = math.rsqrt %25 : vector<8x1xf32>
    %27 = vector.broadcast %26 : vector<8x1xf32> to vector<8x128xf32>
    %28 = arith.mulf %14, %27 : vector<8x128xf32>
    %29 = vector.broadcast %5 : vector<1x128xf32> to vector<8x128xf32>
    %30 = arith.mulf %28, %29 : vector<8x128xf32>
    %31 = vector.broadcast %6 : vector<1x128xf32> to vector<8x128xf32>
    %32 = arith.addf %30, %31 : vector<8x128xf32>
    %cst_15 = arith.constant 5.000000e-01 : f32
    %33 = vector.broadcast %cst_15 : f32 to vector<8x128xf32>
    %34 = arith.mulf %33, %32 : vector<8x128xf32>
    %cst_16 = arith.constant 0.707106769 : f32
    %35 = vector.broadcast %cst_16 : f32 to vector<8x128xf32>
    %36 = arith.mulf %32, %35 : vector<8x128xf32>
    %37 = math.erf %36 : vector<8x128xf32>
    %cst_17 = arith.constant 1.000000e+00 : f32
    %38 = vector.broadcast %cst_17 : f32 to vector<8x128xf32>
    %39 = arith.addf %38, %37 : vector<8x128xf32>
    %40 = arith.mulf %34, %39 : vector<8x128xf32>
    %41 = arith.truncf %40 : vector<8x128xf32> to vector<8x128xbf16>
    %c0_18 = arith.constant 0 : index
    %c0_19 = arith.constant 0 : index
    %42 = vector.load %arg6[%c0_18, %c0_19] : memref<8x128xbf16, #tpu.memory_space<vmem>>, vector<8x128xbf16>
    tpu.vector_store %arg6[%c0_18, %c0_19], %41 {strides = array<i32>} : memref<8x128xbf16, #tpu.memory_space<vmem>>, vector<8x128xbf16>,
    return
  }
  func.func @transform_0(%arg0: i32) -> (i32, i32) {
    %c0_i32 = arith.constant 0 : i32
    %c0_i32_0 = arith.constant 0 : i32
    return %arg0, %c0_i32 : i32, i32
  }
  func.func @transform_1(%arg0: i32) -> (i32, i32) {
    %c0_i32 = arith.constant 0 : i32
    %c0_i32_0 = arith.constant 0 : i32
    %c0_i32_1 = arith.constant 0 : i32
    return %c0_i32, %c0_i32_0 : i32, i32
  }
  func.func @transform_2(%arg0: i32) -> (i32, i32) {
    %c0_i32 = arith.constant 0 : i32
    %c0_i32_0 = arith.constant 0 : i32
    %c0_i32_1 = arith.constant 0 : i32
    return %c0_i32, %c0_i32_0 : i32, i32
  }
  func.func @transform_3(%arg0: i32) -> (i32, i32) {
    %c0_i32 = arith.constant 0 : i32
    %c0_i32_0 = arith.constant 0 : i32
    %c0_i32_1 = arith.constant 0 : i32
    return %c0_i32, %c0_i32_0 : i32, i32
  }
  func.func @transform_4(%arg0: i32) -> (i32, i32) {
    %c0_i32 = arith.constant 0 : i32
    %c0_i32_0 = arith.constant 0 : i32
    %c0_i32_1 = arith.constant 0 : i32
    return %c0_i32, %c0_i32_0 : i32, i32
  }
  func.func @transform_5(%arg0: i32) -> (i32, i32) {
    %c0_i32 = arith.constant 0 : i32
    %c0_i32_0 = arith.constant 0 : i32
    return %arg0, %c0_i32 : i32, i32
  }
}

</mosaic_0001>

<bundles_post_ra>
// kernel: tpu_custom_call.1
= control target key start
LH: loop header
LB: loop body
LE: loop exit
PB: predicated region body
PF: predicated region fallthrough
CT: control target
= control target key end

     0   :  { %10 = vsyncpa [#allocation3], 0  ;;  %s394_s0 = inlined_call_operand.hbm [shape: f32[8,128], index: 0, kind: input, shape index: {}]   ;;  %s395_s1 = inlined_call_operand.hbm [shape: bf16[128,128], index: 1, kind: input, shape index: {}]   ;;  %s396_s2 = inlined_call_operand.vmem [shape: f32[1,128], index: 2, kind: input, shape index: {}]   ;;  %s397_s3 = inlined_call_operand.vmem [shape: f32[1,128], index: 3, kind: input, shape index: {}]   ;;  %s398_s4 = inlined_call_operand.vmem [shape: f32[1,128], index: 4, kind: input, shape index: {}]   ;;  %s399_s5 = inlined_call_operand.hbm [shape: bf16[8,128], index: 5, kind: output, shape index: {}]  }
   0x1   :  { %11 = vsyncpa [#allocation6], 0 }
   0x2   :  { %12 = vsyncpa [#allocation4], 0  ;;  %s339_s18 = smov [#allocation2]   ;;  %s340_s20 = smov [#allocation5]  }
   0x3   :  { %s19_s19 = sshll.u32 %s339_s18, 4  ;;  %s28_s21 = sshll.u32 %s340_s20, 4  ;;  %s20_s19 = int_to_ptr.vmem [resolvable:$true] %s19_s19  ;;  %s29_s21 = int_to_ptr.vmem [resolvable:$true] %s28_s21 }
   0x4   :  { %s281_s22 = scalar_lea.vmem %s20_s19, 128  ;;  %p286_p1 = scmp.lt.s32.totalorder %s20_s19, %s20_s19 }
   0x5   :  { %p282_p0 = scmp.ne.s32.totalorder %s20_s19, %s281_s22  ;;  %p287_p2 = scmp.lt.s32.totalorder %s281_s22, %s281_s22 }
   0x7   :  { %p288_p3 = por %p287_p2, %p286_p1 }
   0x9   :  { %p289_p4 = pnand %p288_p3, %p282_p0 }
   0xb   :  { %292 = shalt.err (!%p289_p4)
}
   0xc   :  { %22 = dma.hbm_to_vmem [thread:$0]  %s394_s0, 128, %s20_s19, [#allocation3]  }
   0xd   :  { %s301_s25 = scalar_lea.vmem %s29_s21, 1024  ;;  %p306_p6 = scmp.lt.s32.totalorder %s29_s21, %s29_s21 }
   0xe   :  { %p302_p5 = scmp.ne.s32.totalorder %s29_s21, %s301_s25  ;;  %p307_p7 = scmp.lt.s32.totalorder %s301_s25, %s301_s25 }
  0x10   :  { %p308_p8 = por %p307_p7, %p306_p6 }
  0x12   :  { %p309_p9 = pnand %p308_p8, %p302_p5 }
  0x14   :  { %312 = shalt.err (!%p309_p9)
}
  0x15   :  { %s341_s26 = smov 64   ;;  %s342_s27 = smov 4  }
  0x16   :  { %34 = dma.hbm_to_vmem [thread:$0]  %s395_s1, 1024, %s29_s21, [#allocation6], %s341_s26, %s341_s26, %s342_s27  }
  0x17   :  { %333 = dma.done.wait [#allocation3], 128  }
  0x18   :  { %334 = vsyncadd [#allocation3], 4294967168 }
  0x19   :  { %335 = dma.done.wait [#allocation6], 1024  }
  0x1a   :  { %336 = vsyncadd [#allocation6], 4294966272  ;;  %v343_v0 = vmov 0.0   ;;  %vm344_vm0 = vmmov 0   ;;  %v261_v1 = vld [vmem:[#allocation5 + $0x38] sm:$0xff]   ;;  %v262_v2 = vld [vmem:[#allocation5 + $0x30] sm:$0xff]  }
  0x1b   :  { %234 = vmatprep.subr.bf16.mxu0 %v343_v0  ;;  %250 = vmatprep.mubr.msk.bf16.mxu0 %vm344_vm0, %v343_v0  ;;  %v263_v3 = vld [vmem:[#allocation5 + $0x28] sm:$0xff]   ;;  %v264_v4 = vld [vmem:[#allocation5 + $0x20] sm:$0xff]   ;;  %v265_v5 = vld [vmem:[#allocation5 + $0x18] sm:$0xff]   ;;  %s345_s8 = smov [#allocation7]  }
  0x1c   :  { %235 = vmatpush3.bf16.msra.mxu0 %v261_v1  ;;  %v266_v6 = vld [vmem:[#allocation5 + $0x10] sm:$0xff]   ;;  %v267_v7 = vld [vmem:[#allocation5 + $0x8] sm:$0xff]   ;;  %v268_v8 = vld [vmem:[#allocation5] sm:$0xff]   ;;  %s204_s9 = sshll.u32 %s345_s8, 4  ;;  %s205_s9 = int_to_ptr.vmem [resolvable:$true] %s204_s9 }
  0x1d   :  { %236 = vmatprep.subr.bf16.mxu0 %v343_v0  ;;  %v48_v9 = vld [vmem:[#allocation2] sm:$0xff]  ;;  %s313_s10 = scalar_lea.vmem %s205_s9, 64  ;;  %p318_p11 = scmp.lt.s32.totalorder %s205_s9, %s205_s9 }
  0x1e   :  { %v49_v10 = vpack.c.bf16 %v48_v9, %v48_v9  ;;  %v214_v11 = vld [vmem:[%s396_s2] ss:$0 sm:$0xff]  ;;  %p314_p10 = scmp.ne.s32.totalorder %s205_s9, %s313_s10  ;;  %p319_p12 = scmp.lt.s32.totalorder %s313_s10, %s313_s10 }
  0x1f   :  { %v223_v28 = vld [vmem:[%s397_s3] ss:$0 sm:$0xff] }
  0x20   :  { %237 = vmatpush3.bf16.msra.mxu0 %v262_v2  ;;  %v224_v30 = vld [vmem:[%s398_s4] ss:$0 sm:$0xff]  ;;  %p320_p13 = por %p319_p12, %p318_p11 }
  0x21   :  { %238 = vmatprep.subr.bf16.mxu0 %v343_v0 }
  0x22   :  { %p321_p0 = pnand %p320_p13, %p314_p10 }
  0x24   :  { %239 = vmatpush3.bf16.msra.mxu0 %v263_v3 }
  0x25   :  { %240 = vmatprep.subr.bf16.mxu0 %v343_v0 }
  0x28   :  { %241 = vmatpush3.bf16.msra.mxu0 %v264_v4 }
  0x29   :  { %242 = vmatprep.subr.bf16.mxu0 %v343_v0 }
  0x2c   :  { %243 = vmatpush3.bf16.msra.mxu0 %v265_v5 }
  0x2d   :  { %244 = vmatprep.subr.bf16.mxu0 %v343_v0 }
  0x30   :  { %245 = vmatpush3.bf16.msra.mxu0 %v266_v6 }
  0x31   :  { %246 = vmatprep.subr.bf16.mxu0 %v343_v0 }
  0x34   :  { %247 = vmatpush3.bf16.msra.mxu0 %v267_v7 }
  0x35   :  { %248 = vmatprep.subr.bf16.mxu0 %v343_v0 }
  0x38   :  { %249 = vmatpush3.bf16.msra.mxu0 %v268_v8 }
  0x3b   :  { %251 = vmatmul.mubr.bf16.vlgmr.msra.gmra.mxu0 %v49_v10 }
  0xfb   :  { %v157_v12 = vpop.f32.mrf.mxu0 }
  0xfc   :  { %v158_v13 = vadd.f32 %v214_v11, %v157_v12 }
  0xfd   :  { %v252_v14 = vpop.f32.mrf.mxu0 }
  0xfe   :  { %163 = vadd.xlane.f32.xlu0 %v158_v13 }
  0xff   :  { %v160_v15 = vpop.f32.mrf.mxu0 }
 0x101   :  { %v253_v16 = vpop.f32.mrf.mxu0 }
 0x187   :  { %v164_v17 = vpop.xlane.xlu0 %163 }
 0x188   :  { %v165_v18 = vmul.f32 0.03125, %v164_v17 }
 0x18a   :  { %v166_v19 = vsub.f32 %v158_v13, %v165_v18  ;;  %v170_v21 = vmul.f32 %v165_v18, %v165_v18 }
 0x18c   :  { %v167_v20 = vmul.f32 %v166_v19, %v166_v19  ;;  %v171_v22 = vmul.f32 96.0, %v170_v21 }
 0x18e   :  { %168 = vadd.xlane.f32.xlu0 %v167_v20 }
 0x217   :  { %v169_v23 = vpop.xlane.xlu0 %168 }
 0x218   :  { %v172_v24 = vsub.f32 %v169_v23, %v171_v22 }
 0x21a   :  { %v173_v25 = vmul.f32 0.03125, %v172_v24 }
 0x21c   :  { %v174_v26 = vadd.f32 1e-05, %v173_v25 }
 0x21e   :  { %269 = vrsqrt.f32 %v174_v26 }
 0x22b   :  { %v270_v27 = vpop.eup %269 }
 0x22c   :  { %v176_v29 = vmul.f32 %v270_v27, %v166_v19 }
 0x22e   :  { %v183_v31 = vmul.f32 %v223_v28, %v176_v29 }
 0x230   :  { %v190_v32 = vadd.f32 %v224_v30, %v183_v31 }
 0x232   :  { %v192_v33 = vmul.f32 0.70710677, %v190_v32  ;;  %v191_v35 = vmul.f32 0.5, %v190_v32 }
 0x234   :  { %271 = verf.f32 %v192_v33 }
 0x241   :  { %v272_v34 = vpop.eup %271 }
 0x242   :  { %v194_v36 = vadd.f32 1.0, %v272_v34 }
 0x244   :  { %v195_v37 = vmul.f32 %v194_v36, %v191_v35 }
 0x246   :  { %v196_v38 = vpack.c.bf16 %v195_v37, %v195_v37 }
 0x248   :  { %197 = vst [vmem:[#allocation7] sm:$0xf] %v196_v38 }
 0x249   :  { %324 = shalt.err (!%p321_p0)
}
 0x24a   :  { %207 = dma.vmem_to_hbm [thread:$0]  %s205_s9, 64, %s399_s5, [#allocation4]  }
 0x24b   :  { %337 = dma.done.wait [#allocation4], 64  }
 0x24c   :  { %338 = vsyncadd [#allocation4], 4294967232 }
 0x24d   :  { %211 = vsyncpa [#allocation3], 1 }
 0x24e   :  { %212 = vsyncpa [#allocation6], 1 }
 0x24f   :  { %213 = vsyncpa [#allocation4], 1 }

</bundles_post_ra>
